<compile_context>
chip_gen: v7x
topology: tpu7x:2x2x1
jax: 0.10.0
libtpu: 0.0.40
codegen_flags: <defaults>
</compile_context>

<pallas_src>
import numpy as np
import jax
import jax.numpy as jnp
from jax import lax
from jax.experimental import pallas as pl
from jax.experimental.pallas import tpu as pltpu


# Phase slab order (dy, dx).  Chosen so that:
#   * halo-column taps (1,2),(0,2) read slabs [0:2C]   (phases (1,0),(0,0))  -> one K=2C dot
#   * halo-row    taps (2,0),(2,1) read slabs [C:3C]   (phases (0,0),(0,1))  -> one K=2C dot
#   * corner tap  (2,2)            reads slab  [C:2C]  (phase  (0,0))        -> one K=C  dot
_PHASE_ORDER = ((1, 0), (0, 0), (0, 1), (1, 1))


# ----------------------------------------------------------------------------
# wrapper-side layout helpers (pure XLA glue)
# ----------------------------------------------------------------------------
def _round_up(v, m):
    return ((v + m - 1) // m) * m


def _tpu_generation():
    try:
        kind = jax.devices()[0].device_kind.lower()
    except Exception:
        return 0
    for g in (7, 6, 5, 4):
        if f"v{g}" in kind:
            return g
    return 0


def _conv_tiles(m, c, gen):
    """Pick (TM, tco) for the GEMM-form conv.
    tco is 128-aligned when possible (v5e 4x128x128 MXU; keeps the f32 accumulator
    small on all generations); TM targets ~256 rows (512 on v5e when the accumulator
    budget allows) and is capped so TM*tco*4B <= ~128 KiB (32 vregs, no spills)."""
    tco = 128 if (c > 128 and c % 128 == 0) else c
    acc_budget = 128 * 1024
    tm_target = 512 if gen == 5 else 256
    tm_cap = max(8, (acc_budget // max(tco * 4, 1)) // 8 * 8)
    tm = min(tm_target, tm_cap, _round_up(m, 8))
    return max(tm, 8), tco


def _space_to_depth(x_nhwc, pad_hw):
    """Pad bottom/right and split into 2x2 phases packed on the channel (lane) axis,
    slab order = _PHASE_ORDER:  out[n,i,j, slab*C + c] == x_pad[n, 2i+dy, 2j+dx, c]."""
    N, H, W, C = x_nhwc.shape
    ph, pw = pad_hw
    xpad = jnp.pad(x_nhwc, ((0, 0), (0, ph), (0, pw), (0, 0)))
    Hy, Wx = (H + ph) // 2, (W + pw) // 2
    x6 = xpad.reshape(N, Hy, 2, Wx, 2, C)
    return jnp.concatenate([x6[:, :, dy, :, dx, :] for dy, dx in _PHASE_ORDER], axis=-1)


def _pool_row_strip(ho, w, c, itemsize, target_bytes=1 << 20):
    # Size the input block (2 * tr * W * C elements) to ~1 MiB; grid uses pl.cdiv so a
    # ragged last strip is fine (no divisibility fallback to tr=1).
    row_pair_bytes = 2 * w * c * itemsize
    tr = max(1, target_bytes // max(row_pair_bytes, 1))
    return int(min(tr, ho))


# ----------------------------------------------------------------------------
# Kernel 1: stride-2 3x3 conv as a 4-dot GEMM over M = N*Ho*Wo output pixels
# refs: xa (TM,4C) xb (TM,2C) xc (TM,2C) xd (TM,C)   -- operand slabs (K sums to 9C)
#       wa (4C,tco) wb (2C,tco) wc (2C,tco) wd (C,tco) b (1,tco)
#       o  (TM,tco)
# ----------------------------------------------------------------------------
def _down_conv_kernel(xa_ref, xb_ref, xc_ref, xd_ref,
                      wa_ref, wb_ref, wc_ref, wd_ref, b_ref, o_ref):
    f32 = jnp.float32
    acc = jnp.dot(xa_ref[...], wa_ref[...], preferred_element_type=f32)   # taps (0..1,0..1)
    acc += jnp.dot(xb_ref[...], wb_ref[...], preferred_element_type=f32)  # taps (1,2),(0,2)
    acc += jnp.dot(xc_ref[...], wc_ref[...], preferred_element_type=f32)  # taps (2,0),(2,1)
    acc += jnp.dot(xd_ref[...], wd_ref[...], preferred_element_type=f32)  # tap  (2,2)
    o_ref[...] = (acc + b_ref[...].astype(f32)).astype(o_ref.dtype)


# ----------------------------------------------------------------------------
# Kernel 2: 2x2 stride-2 average pool, fused gather from un-shuffled NHWC rows
# refs: x_ref (TR, 2, Wo, 2C)  -- free metadata view of NHWC: [row-pair, dy, col-pair, dx*C+c]
#       o_ref (TR, Wo, C)
# ----------------------------------------------------------------------------
def _avg_pool_kernel(x_ref, o_ref):
    C = o_ref.shape[-1]
    x = x_ref[...].astype(jnp.float32)          # (TR, 2, Wo, 2C)
    s = x[:, 0] + x[:, 1]                       # add row pairs        (TR, Wo, 2C)
    o_ref[...] = (0.25 * (s[:, :, :C] + s[:, :, C:])).astype(o_ref.dtype)


# ----------------------------------------------------------------------------
# Wrapper (NCHW in / NCHW out, matching the PyTorch module)
# ----------------------------------------------------------------------------
def downsample_forward(x_nchw, params=None, *, with_conv=True):
    N, C, H, W = x_nchw.shape
    assert H % 2 == 0 and W % 2 == 0, "even spatial dims expected"
    # TODO(synk): odd H/W (PyTorch still defines an output) would need extra edge
    # handling in the phase decomposition; taming-transformers only uses even sizes.
    Ho, Wo = H // 2, W // 2
    x = jnp.transpose(x_nchw, (0, 2, 3, 1))               # NCHW -> NHWC (glue)
    gen = _tpu_generation()
    isz = int(x.dtype.itemsize)

    if with_conv:
        # Pad right/bottom by 2 (covers the module's (0,1,0,1) zero pad; the extra zero
        # row/col only meets zero-weight positions) so the image splits into 2x2 phases.
        xp = _space_to_depth(x, (2, 2))                   # (N, Ho+1, Wo+1, 4C)
        M = N * Ho * Wo

        # Lane-dense, M-flattened matmul operands (wrapper-side layout plumbing).
        xa = xp[:, :Ho, :Wo, :].reshape(M, 4 * C)          # (oy,  ox  ) all phases  K=4C
        xb = xp[:, :Ho, 1:, 0:2 * C].reshape(M, 2 * C)     # (oy,  ox+1) ph (1,0),(0,0) K=2C
        xc = xp[:, 1:, :Wo, C:3 * C].reshape(M, 2 * C)     # (oy+1,ox  ) ph (0,0),(0,1) K=2C
        xd = xp[:, 1:, 1:, C:2 * C].reshape(M, C)          # (oy+1,ox+1) ph (0,0)       K=C

        w = params["w"].astype(x.dtype)                    # (Cout, Cin, 3, 3), Cout==Cin==C
        b = params["b"].astype(jnp.float32).reshape(1, C)

        def tap(ky, kx):                                   # (Cin, Cout) weight slab
            return jnp.transpose(w[:, :, ky, kx], (1, 0))

        wa = jnp.concatenate([tap(1, 0), tap(0, 0), tap(0, 1), tap(1, 1)], axis=0)  # (4C,C)
        wb = jnp.concatenate([tap(1, 2), tap(0, 2)], axis=0)                        # (2C,C)
        wc = jnp.concatenate([tap(2, 0), tap(2, 1)], axis=0)                        # (2C,C)
        wd = tap(2, 2)                                                              # (C, C)

        tm, tco = _conv_tiles(M, C, gen)
        n_m, n_ct = pl.cdiv(M, tm), pl.cdiv(C, tco)

        cost = pl.CostEstimate(
            flops=2 * M * 9 * C * C,
            transcendentals=0,
            bytes_accessed=(M * 9 * C + 9 * C * C + M * C) * isz + C * 4)

        out_flat = pl.pallas_call(
            _down_conv_kernel,
            out_shape=jax.ShapeDtypeStruct((M, C), x.dtype),
            # C_out axis outer -> weight/bias blocks stay resident across the inner M axis.
            grid=(n_ct, n_m),
            in_specs=[
                pl.BlockSpec((tm, 4 * C), lambda ct, m: (m, 0)),
                pl.BlockSpec((tm, 2 * C), lambda ct, m: (m, 0)),
                pl.BlockSpec((tm, 2 * C), lambda ct, m: (m, 0)),
                pl.BlockSpec((tm, C), lambda ct, m: (m, 0)),
                pl.BlockSpec((4 * C, tco), lambda ct, m: (0, ct)),
                pl.BlockSpec((2 * C, tco), lambda ct, m: (0, ct)),
                pl.BlockSpec((2 * C, tco), lambda ct, m: (0, ct)),
                pl.BlockSpec((C, tco), lambda ct, m: (0, ct)),
                pl.BlockSpec((1, tco), lambda ct, m: (0, ct)),
            ],
            out_specs=pl.BlockSpec((tm, tco), lambda ct, m: (m, ct)),
            compiler_params=pltpu.CompilerParams(
                dimension_semantics=("parallel", "parallel")),
            cost_estimate=cost,
        )(xa, xb, xc, xd, wa, wb, wc, wd, b)
        out = out_flat.reshape(N, Ho, Wo, C)
    else:
        # Free metadata view of the NHWC tensor pairing adjacent rows / columns:
        #   x5[n, i, dy, j, dx*C + c] == x[n, 2i+dy, 2j+dx, c]
        x5 = x.reshape(N, Ho, 2, Wo, 2 * C)
        tr = _pool_row_strip(Ho, W, C, isz)
        out = pl.pallas_call(
            _avg_pool_kernel,
            out_shape=jax.ShapeDtypeStruct((N, Ho, Wo, C), x.dtype),
            grid=(N, pl.cdiv(Ho, tr)),
            in_specs=[pl.BlockSpec((None, tr, 2, Wo, 2 * C),
                                   lambda n, r: (n, r, 0, 0, 0))],
            out_specs=pl.BlockSpec((None, tr, Wo, C), lambda n, r: (n, r, 0, 0)),
            compiler_params=pltpu.CompilerParams(
                dimension_semantics=("parallel", "parallel")),
        )(x5)

    return jnp.transpose(out, (0, 3, 1, 2))               # NHWC -> NCHW (glue)


# Pure-JAX reference (mirrors the PyTorch forward) for a correctness check.
def downsample_ref_jax(x_nchw, params=None, *, with_conv=True):
    if with_conv:
        xpad = jnp.pad(x_nchw, ((0, 0), (0, 0), (0, 1), (0, 1)))
        y = lax.conv_general_dilated(
            xpad, params["w"], window_strides=(2, 2), padding="VALID",
            dimension_numbers=("NCHW", "OIHW", "NCHW"))
        return y + params["b"][None, :, None, None]
    N, C, H, W = x_nchw.shape
    return x_nchw.reshape(N, C, H // 2, 2, W // 2, 2).mean(axis=(3, 5))


if __name__ == "__main__":
    key = jax.random.PRNGKey(0)
    kx, kw, kb = jax.random.split(key, 3)

    N, C, H, W = 2, 4, 16, 16
    x = jax.random.normal(kx, (N, C, H, W), dtype=jnp.float32)
    # Deterministic synthetic parameters (shapes per nn.Conv2d(C, C, 3, stride=2, pad=0)).
    params = {
        "w": 0.1 * jax.random.normal(kw, (C, C, 3, 3), dtype=jnp.float32),
        "b": 0.1 * jax.random.normal(kb, (C,), dtype=jnp.float32),
    }

    # with_conv=True path: asymmetric zero pad + stride-2 3x3 conv (fused GEMM in Pallas)
    y = downsample_forward(x, params, with_conv=True)
    jax.block_until_ready(y)
    assert y.shape == (N, C, H // 2, W // 2) and y.dtype == x.dtype
    y_ref = downsample_ref_jax(x, params, with_conv=True)
    np.testing.assert_allclose(np.asarray(y), np.asarray(y_ref), atol=1e-4, rtol=1e-4)

    # with_conv=False path: 2x2 average pool (fused in-kernel gather from NHWC)
    y2 = downsample_forward(x, with_conv=False)
    jax.block_until_ready(y2)
    y2_ref = downsample_ref_jax(x, with_conv=False)
    np.testing.assert_allclose(np.asarray(y2), np.asarray(y2_ref), atol=1e-5, rtol=1e-5)

    print("KERNEL_OK")
</pallas_src>

<mosaic_0001>
module attributes {stable_mosaic.version = 11 : i64} {
  func.func @_down_conv_kernel(%arg0: i32, %arg1: i32, %arg2: memref<128x16xf32, #tpu.memory_space<vmem>>, %arg3: memref<128x8xf32, #tpu.memory_space<vmem>>, %arg4: memref<128x8xf32, #tpu.memory_space<vmem>>, %arg5: memref<128x4xf32, #tpu.memory_space<vmem>>, %arg6: memref<16x4xf32, #tpu.memory_space<vmem>>, %arg7: memref<8x4xf32, #tpu.memory_space<vmem>>, %arg8: memref<8x4xf32, #tpu.memory_space<vmem>>, %arg9: memref<4x4xf32, #tpu.memory_space<vmem>>, %arg10: memref<1x4xf32, #tpu.memory_space<vmem>>, %arg11: memref<128x4xf32, #tpu.memory_space<vmem>>) attributes {dimension_semantics = [#tpu.dimension_semantics<parallel>, #tpu.dimension_semantics<parallel>], iteration_bounds = array<i64: 1, 1>, scalar_prefetch = 0 : i64, scratch_operands = 0 : i64, tpu.core_type = #tpu.core_type<tc>, window_params = [{transform_indices = @transform_0, window_bounds = array<i64: 128, 16>}, {transform_indices = @transform_1, window_bounds = array<i64: 128, 8>}, {transform_indices = @transform_2, window_bounds = array<i64: 128, 8>}, {transform_indices = @transform_3, window_bounds = array<i64: 128, 4>}, {transform_indices = @transform_4, window_bounds = array<i64: 16, 4>}, {transform_indices = @transform_5, window_bounds = array<i64: 8, 4>}, {transform_indices = @transform_6, window_bounds = array<i64: 8, 4>}, {transform_indices = @transform_7, window_bounds = array<i64: 4, 4>}, {transform_indices = @transform_8, window_bounds = array<i64: 1, 4>}, {transform_indices = @transform_9, window_bounds = array<i64: 128, 4>}]} {
    %c0 = arith.constant 0 : index
    %c0_0 = arith.constant 0 : index
    %0 = vector.load %arg2[%c0, %c0_0] : memref<128x16xf32, #tpu.memory_space<vmem>>, vector<128x16xf32>
    %c0_1 = arith.constant 0 : index
    %c0_2 = arith.constant 0 : index
    %1 = vector.load %arg6[%c0_1, %c0_2] : memref<16x4xf32, #tpu.memory_space<vmem>>, vector<16x4xf32>
    %cst = arith.constant dense<0.000000e+00> : vector<128x4xf32>
    %2 = tpu.matmul %0, %1, %cst {dimension_numbers = #tpu.dot_dimension_numbers<[1], [0], [0], [1], [0, 0, 1, 1], [], []>} : vector<128x16xf32>, vector<16x4xf32>, vector<128x4xf32> -> vector<128x4xf32>
    %c0_3 = arith.constant 0 : index
    %c0_4 = arith.constant 0 : index
    %3 = vector.load %arg3[%c0_3, %c0_4] : memref<128x8xf32, #tpu.memory_space<vmem>>, vector<128x8xf32>
    %c0_5 = arith.constant 0 : index
    %c0_6 = arith.constant 0 : index
    %4 = vector.load %arg7[%c0_5, %c0_6] : memref<8x4xf32, #tpu.memory_space<vmem>>, vector<8x4xf32>
    %cst_7 = arith.constant dense<0.000000e+00> : vector<128x4xf32>
    %5 = tpu.matmul %3, %4, %cst_7 {dimension_numbers = #tpu.dot_dimension_numbers<[1], [0], [0], [1], [0, 0, 1, 1], [], []>} : vector<128x8xf32>, vector<8x4xf32>, vector<128x4xf32> -> vector<128x4xf32>
    %6 = arith.addf %2, %5 : vector<128x4xf32>
    %c0_8 = arith.constant 0 : index
    %c0_9 = arith.constant 0 : index
    %7 = vector.load %arg4[%c0_8, %c0_9] : memref<128x8xf32, #tpu.memory_space<vmem>>, vector<128x8xf32>
    %c0_10 = arith.constant 0 : index
    %c0_11 = arith.constant 0 : index
    %8 = vector.load %arg8[%c0_10, %c0_11] : memref<8x4xf32, #tpu.memory_space<vmem>>, vector<8x4xf32>
    %cst_12 = arith.constant dense<0.000000e+00> : vector<128x4xf32>
    %9 = tpu.matmul %7, %8, %cst_12 {dimension_numbers = #tpu.dot_dimension_numbers<[1], [0], [0], [1], [0, 0, 1, 1], [], []>} : vector<128x8xf32>, vector<8x4xf32>, vector<128x4xf32> -> vector<128x4xf32>
    %10 = arith.addf %6, %9 : vector<128x4xf32>
    %c0_13 = arith.constant 0 : index
    %c0_14 = arith.constant 0 : index
    %11 = vector.load %arg5[%c0_13, %c0_14] : memref<128x4xf32, #tpu.memory_space<vmem>>, vector<128x4xf32>
    %c0_15 = arith.constant 0 : index
    %c0_16 = arith.constant 0 : index
    %12 = vector.load %arg9[%c0_15, %c0_16] : memref<4x4xf32, #tpu.memory_space<vmem>>, vector<4x4xf32>
    %cst_17 = arith.constant dense<0.000000e+00> : vector<128x4xf32>
    %13 = tpu.matmul %11, %12, %cst_17 {dimension_numbers = #tpu.dot_dimension_numbers<[1], [0], [0], [1], [0, 0, 1, 1], [], []>} : vector<128x4xf32>, vector<4x4xf32>, vector<128x4xf32> -> vector<128x4xf32>
    %14 = arith.addf %10, %13 : vector<128x4xf32>
    %c0_18 = arith.constant 0 : index
    %c0_19 = arith.constant 0 : index
    %15 = vector.load %arg10[%c0_18, %c0_19] : memref<1x4xf32, #tpu.memory_space<vmem>>, vector<1x4xf32>
    %16 = vector.broadcast %15 : vector<1x4xf32> to vector<128x4xf32>
    %17 = arith.addf %14, %16 : vector<128x4xf32>
    %c0_20 = arith.constant 0 : index
    %c0_21 = arith.constant 0 : index
    %18 = vector.load %arg11[%c0_20, %c0_21] : memref<128x4xf32, #tpu.memory_space<vmem>>, vector<128x4xf32>
    tpu.vector_store %arg11[%c0_20, %c0_21], %17 {strides = array<i32>} : memref<128x4xf32, #tpu.memory_space<vmem>>, vector<128x4xf32>,
    return
  }
  func.func @transform_0(%arg0: i32, %arg1: i32) -> (i32, i32) {
    %c0_i32 = arith.constant 0 : i32
    %c0_i32_0 = arith.constant 0 : i32
    return %arg1, %c0_i32 : i32, i32
  }
  func.func @transform_1(%arg0: i32, %arg1: i32) -> (i32, i32) {
    %c0_i32 = arith.constant 0 : i32
    %c0_i32_0 = arith.constant 0 : i32
    return %arg1, %c0_i32 : i32, i32
  }
  func.func @transform_2(%arg0: i32, %arg1: i32) -> (i32, i32) {
    %c0_i32 = arith.constant 0 : i32
    %c0_i32_0 = arith.constant 0 : i32
    return %arg1, %c0_i32 : i32, i32
  }
  func.func @transform_3(%arg0: i32, %arg1: i32) -> (i32, i32) {
    %c0_i32 = arith.constant 0 : i32
    %c0_i32_0 = arith.constant 0 : i32
    return %arg1, %c0_i32 : i32, i32
  }
  func.func @transform_4(%arg0: i32, %arg1: i32) -> (i32, i32) {
    %c0_i32 = arith.constant 0 : i32
    %c0_i32_0 = arith.constant 0 : i32
    return %c0_i32, %arg0 : i32, i32
  }
  func.func @transform_5(%arg0: i32, %arg1: i32) -> (i32, i32) {
    %c0_i32 = arith.constant 0 : i32
    %c0_i32_0 = arith.constant 0 : i32
    return %c0_i32, %arg0 : i32, i32
  }
  func.func @transform_6(%arg0: i32, %arg1: i32) -> (i32, i32) {
    %c0_i32 = arith.constant 0 : i32
    %c0_i32_0 = arith.constant 0 : i32
    return %c0_i32, %arg0 : i32, i32
  }
  func.func @transform_7(%arg0: i32, %arg1: i32) -> (i32, i32) {
    %c0_i32 = arith.constant 0 : i32
    %c0_i32_0 = arith.constant 0 : i32
    return %c0_i32, %arg0 : i32, i32
  }
  func.func @transform_8(%arg0: i32, %arg1: i32) -> (i32, i32) {
    %c0_i32 = arith.constant 0 : i32
    %c0_i32_0 = arith.constant 0 : i32
    return %c0_i32, %arg0 : i32, i32
  }
  func.func @transform_9(%arg0: i32, %arg1: i32) -> (i32, i32) {
    %c0_i32 = arith.constant 0 : i32
    return %arg1, %arg0 : i32, i32
  }
}

</mosaic_0001>

<bundles_post_ra>
// kernel: tpu_custom_call.1
= control target key start
LH: loop header
LB: loop body
LE: loop exit
PB: predicated region body
PF: predicated region fallthrough
CT: control target
= control target key end

     0   :  { %vm67_vm0 = vcmask 64512   ;;  %vm747_vm1 = vcmask 1043456   ;;  %vm261_vm2 = vcmask 130048   ;;  %vm698_vm3 = vcmask 31744   ;;  %s1654_s5 = inlined_call_operand.vmem [shape: f32[8,4], index: 5, kind: input, shape index: {}]   ;;  %s1655_s6 = inlined_call_operand.vmem [shape: f32[8,4], index: 6, kind: input, shape index: {}]   ;;  %s1656_s1 = inlined_call_operand.vmem [shape: f32[128,8], index: 1, kind: input, shape index: {}]   ;;  %s1657_s2 = inlined_call_operand.vmem [shape: f32[128,8], index: 2, kind: input, shape index: {}]   ;;  %s1658_s4 = inlined_call_operand.vmem [shape: f32[16,4], index: 4, kind: input, shape index: {}]   ;;  %s1659_s7 = inlined_call_operand.vmem [shape: f32[4,4], index: 7, kind: input, shape index: {}]   ;;  %s1660_s0 = inlined_call_operand.vmem [shape: f32[128,16], index: 0, kind: input, shape index: {}]   ;;  %s1661_s3 = inlined_call_operand.vmem [shape: f32[128,4], index: 3, kind: input, shape index: {}]   ;;  %s1662_s8 = inlined_call_operand.vmem [shape: f32[1,4], index: 8, kind: input, shape index: {}]   ;;  %s1663_s9 = inlined_call_operand.vmem [shape: f32[128,4], index: 9, kind: output, shape index: {}]  }
   0x1   :  { %v66_v0 = vld [vmem:[%s1654_s5] sm:$0xff]  ;;  %v51_v4 = vld [vmem:[%s1656_s1 + $0x8] sm:$0xff]  ;;  %v52_v10 = vld [vmem:[%s1656_s1 + $0x10] sm:$0xff] }
   0x2   :  { %v471_v1 = vld [vmem:[%s1655_s6] sm:$0xff]  ;;  %1090 = vmatprep.subr.mxu1 %v66_v0  ;;  %v49_v6 = vld [vmem:[%s1658_s4 + $0x8] sm:$0xff]  ;;  %v457_v11 = vld [vmem:[%s1657_s2 + $0x10] sm:$0xff] }
   0x3   :  { %v50_v2 = vld [vmem:[%s1656_s1] sm:$0xff]  ;;  %1144 = vmatprep.subr.mxu0 %v471_v1  ;;  %1091 = vmatpush3.msra.mxu1 %v66_v0  ;;  %v456_v7 = vld [vmem:[%s1657_s2 + $0x8] sm:$0xff]  ;;  %v53_v12 = vld [vmem:[%s1656_s1 + $0x18] sm:$0xff] }
   0x4   :  { %v455_v3 = vld [vmem:[%s1657_s2] sm:$0xff]  ;;  %1092 = vmatprep.mubr.msk.f32.mxu1 %vm67_vm0, %v50_v2  ;;  %1145 = vmatpush3.msra.mxu0 %v471_v1  ;;  %v458_v13 = vld [vmem:[%s1657_s2 + $0x18] sm:$0xff]  ;;  %v55_v16 = vld [vmem:[%s1656_s1 + $0x28] sm:$0xff] }
   0x5   :  { %v48_v5 = vld [vmem:[%s1658_s4] sm:$0xff]  ;;  %1146 = vmatprep.mubr.msk.f32.mxu0 %vm67_vm0, %v455_v3  ;;  %1093 = vmatmul.mubr.msk.f32.vlgmr.msra.gmra.mrb[0].mxu1 %vm67_vm0, %v51_v4  ;;  %v460_v17 = vld [vmem:[%s1657_s2 + $0x28] sm:$0xff]  ;;  %v56_v18 = vld [vmem:[%s1656_s1 + $0x30] sm:$0xff] }
   0x6   :  { %v697_v8 = vld [vmem:[%s1659_s7] sm:$0xf]  ;;  %v1196_v9 = vpack.c.bf16 %v49_v6, %v48_v5  ;;  %1147 = vmatmul.mubr.msk.f32.vlgmr.msra.gmra.mrb[0].mxu0 %vm67_vm0, %v456_v7  ;;  %1095 = vmatprep.mubr.msk.f32.mxu1 %vm67_vm0, %v52_v10  ;;  %v461_v19 = vld [vmem:[%s1657_s2 + $0x30] sm:$0xff]  ;;  %v57_v20 = vld [vmem:[%s1656_s1 + $0x38] sm:$0xff] }
   0x7   :  { %1170 = vmatprep.subr.msk.mxu0 %vm747_vm1, %v697_v8  ;;  %v54_v14 = vld [vmem:[%s1656_s1 + $0x20] sm:$0xff]  ;;  %1149 = vmatprep.mubr.msk.f32.mxu0 %vm67_vm0, %v457_v11  ;;  %v462_v21 = vld [vmem:[%s1657_s2 + $0x38] sm:$0xff]  ;;  %v59_v24 = vld [vmem:[%s1656_s1 + $0x48] sm:$0xff] }
   0x8   :  { %1197 = vmatprep.subr.bf16.mxu1 %v1196_v9  ;;  %1171 = vmatpush3.msk.msra.mxu0 %vm747_vm1, %v697_v8  ;;  %v459_v15 = vld [vmem:[%s1657_s2 + $0x20] sm:$0xff]  ;;  %v464_v25 = vld [vmem:[%s1657_s2 + $0x48] sm:$0xff]  ;;  %v60_v26 = vld [vmem:[%s1656_s1 + $0x50] sm:$0xff] }
   0x9   :  { %1199 = vmatpush3.bf16.msra.mxu1 %v1196_v9  ;;  %v58_v22 = vld [vmem:[%s1656_s1 + $0x40] sm:$0xff]  ;;  %v465_v27 = vld [vmem:[%s1657_s2 + $0x50] sm:$0xff]  ;;  %v61_v28 = vld [vmem:[%s1656_s1 + $0x58] sm:$0xff] }
   0xa   :  { %1096 = vmatmul.mubr.msk.f32.gmra.mrb[2].mxu1 %vm67_vm0, %v53_v12  ;;  %1150 = vmatmul.mubr.msk.f32.gmra.mrb[2].mxu0 %vm67_vm0, %v458_v13  ;;  %v463_v23 = vld [vmem:[%s1657_s2 + $0x40] sm:$0xff]  ;;  %v466_v29 = vld [vmem:[%s1657_s2 + $0x58] sm:$0xff]  ;;  %v63_v32 = vld [vmem:[%s1656_s1 + $0x68] sm:$0xff] }
   0xb   :  { %1098 = vmatprep.mubr.msk.f32.mxu1 %vm67_vm0, %v54_v14  ;;  %1152 = vmatprep.mubr.msk.f32.mxu0 %vm67_vm0, %v459_v15  ;;  %v62_v30 = vld [vmem:[%s1656_s1 + $0x60] sm:$0xff]  ;;  %v468_v33 = vld [vmem:[%s1657_s2 + $0x68] sm:$0xff]  ;;  %v64_v34 = vld [vmem:[%s1656_s1 + $0x70] sm:$0xff] }
   0xc   :  { %v467_v31 = vld [vmem:[%s1657_s2 + $0x60] sm:$0xff]  ;;  %v469_v35 = vld [vmem:[%s1657_s2 + $0x70] sm:$0xff]  ;;  %v65_v36 = vld [vmem:[%s1656_s1 + $0x78] sm:$0xff] }
   0xd   :  { %v470_v37 = vld [vmem:[%s1657_s2 + $0x78] sm:$0xff]  ;;  %v32_v38 = vld [vmem:[%s1660_s0] sm:$0xff]  ;;  %v33_v40 = vld [vmem:[%s1660_s0 + $0x8] sm:$0xff] }
   0xe   :  { %1099 = vmatmul.mubr.msk.f32.gmra.mrb[4].mxu1 %vm67_vm0, %v55_v16  ;;  %1153 = vmatmul.mubr.msk.f32.gmra.mrb[4].mxu0 %vm67_vm0, %v460_v17  ;;  %v681_v39 = vld [vmem:[%s1661_s3] sm:$0xff]  ;;  %v682_v41 = vld [vmem:[%s1661_s3 + $0x8] sm:$0xff]  ;;  %v34_v42 = vld [vmem:[%s1660_s0 + $0x10] sm:$0xff] }
   0xf   :  { %1101 = vmatprep.mubr.msk.f32.mxu1 %vm67_vm0, %v56_v18  ;;  %1155 = vmatprep.mubr.msk.f32.mxu0 %vm67_vm0, %v461_v19  ;;  %v683_v43 = vld [vmem:[%s1661_s3 + $0x10] sm:$0xff]  ;;  %v35_v44 = vld [vmem:[%s1660_s0 + $0x18] sm:$0xff]  ;;  %v36_v46 = vld [vmem:[%s1660_s0 + $0x20] sm:$0xff] }
  0x10   :  { %v684_v45 = vld [vmem:[%s1661_s3 + $0x18] sm:$0xff]  ;;  %v685_v47 = vld [vmem:[%s1661_s3 + $0x20] sm:$0xff]  ;;  %v37_v48 = vld [vmem:[%s1660_s0 + $0x28] sm:$0xff] }
  0x11   :  { %v686_v49 = vld [vmem:[%s1661_s3 + $0x28] sm:$0xff]  ;;  %v38_v50 = vld [vmem:[%s1660_s0 + $0x30] sm:$0xff]  ;;  %v39_v52 = vld [vmem:[%s1660_s0 + $0x38] sm:$0xff] }
  0x12   :  { %1102 = vmatmul.mubr.msk.f32.gmra.mrb[6].mxu1 %vm67_vm0, %v57_v20  ;;  %1156 = vmatmul.mubr.msk.f32.gmra.mrb[6].mxu0 %vm67_vm0, %v462_v21  ;;  %v687_v51 = vld [vmem:[%s1661_s3 + $0x30] sm:$0xff]  ;;  %v688_v53 = vld [vmem:[%s1661_s3 + $0x38] sm:$0xff]  ;;  %v40_v54 = vld [vmem:[%s1660_s0 + $0x40] sm:$0xff] }
  0x13   :  { %1104 = vmatprep.mubr.msk.f32.mxu1 %vm67_vm0, %v58_v22  ;;  %1158 = vmatprep.mubr.msk.f32.mxu0 %vm67_vm0, %v463_v23  ;;  %v689_v55 = vld [vmem:[%s1661_s3 + $0x40] sm:$0xff]  ;;  %v41_v56 = vld [vmem:[%s1660_s0 + $0x48] sm:$0xff]  ;;  %v42_v58 = vld [vmem:[%s1660_s0 + $0x50] sm:$0xff] }
  0x14   :  { %v690_v57 = vld [vmem:[%s1661_s3 + $0x48] sm:$0xff]  ;;  %v691_v59 = vld [vmem:[%s1661_s3 + $0x50] sm:$0xff]  ;;  %v43_v60 = vld [vmem:[%s1660_s0 + $0x58] sm:$0xff] }
  0x15   :  { %v692_v61 = vld [vmem:[%s1661_s3 + $0x58] sm:$0xff]  ;;  %v44_v62 = vld [vmem:[%s1660_s0 + $0x60] sm:$0xff]  ;;  %v45_v0 = vld [vmem:[%s1660_s0 + $0x68] sm:$0xff] }
  0x16   :  { %1105 = vmatmul.mubr.msk.f32.gmra.mrb[8].mxu1 %vm67_vm0, %v59_v24  ;;  %1159 = vmatmul.mubr.msk.f32.gmra.mrb[8].mxu0 %vm67_vm0, %v464_v25  ;;  %v693_v63 = vld [vmem:[%s1661_s3 + $0x60] sm:$0xff]  ;;  %v694_v1 = vld [vmem:[%s1661_s3 + $0x68] sm:$0xff]  ;;  %v46_v2 = vld [vmem:[%s1660_s0 + $0x70] sm:$0xff] }
  0x17   :  { %1107 = vmatprep.mubr.msk.f32.mxu1 %vm67_vm0, %v60_v26  ;;  %1161 = vmatprep.mubr.msk.f32.mxu0 %vm67_vm0, %v465_v27  ;;  %v695_v3 = vld [vmem:[%s1661_s3 + $0x70] sm:$0xff]  ;;  %v47_v4 = vld [vmem:[%s1660_s0 + $0x78] sm:$0xff]  ;;  %v1572_v8 = vld [vmem:[%s1662_s8] ss:$0 sm:$0xff] }
  0x18   :  { %v696_v5 = vld [vmem:[%s1661_s3 + $0x78] sm:$0xff] }
  0x1a   :  { %1108 = vmatmul.mubr.msk.f32.gmra.mrb[10].mxu1 %vm67_vm0, %v61_v28  ;;  %1162 = vmatmul.mubr.msk.f32.gmra.mrb[10].mxu0 %vm67_vm0, %v466_v29 }
  0x1b   :  { %1110 = vmatprep.mubr.msk.f32.mxu1 %vm67_vm0, %v62_v30  ;;  %1164 = vmatprep.mubr.msk.f32.mxu0 %vm67_vm0, %v467_v31 }
  0x1e   :  { %1111 = vmatmul.mubr.msk.f32.gmra.mrb[12].mxu1 %vm67_vm0, %v63_v32  ;;  %1165 = vmatmul.mubr.msk.f32.gmra.mrb[12].mxu0 %vm67_vm0, %v468_v33 }
  0x1f   :  { %1113 = vmatprep.mubr.msk.f32.mxu1 %vm67_vm0, %v64_v34  ;;  %1167 = vmatprep.mubr.msk.f32.mxu0 %vm67_vm0, %v469_v35 }
  0x22   :  { %1114 = vmatmul.mubr.msk.f32.gmra.mrb[14].mxu1 %vm67_vm0, %v65_v36  ;;  %1168 = vmatmul.mubr.msk.f32.gmra.mrb[14].mxu0 %vm67_vm0, %v470_v37 }
  0x23   :  { %1120 = vmatprep.mubr.msk.f32.mxu1 %vm261_vm2, %v32_v38  ;;  %1172 = vmatprep.mubr.msk.f32.mxu0 %vm698_vm3, %v681_v39 }
  0x26   :  { %1121 = vmatmul.mubr.msk.f32.vlgmr.msra.gmra.mrb[0].mxu1 %vm261_vm2, %v33_v40  ;;  %1173 = vmatmul.mubr.msk.f32.vlgmr.msra.gmra.mrb[0].mxu0 %vm698_vm3, %v682_v41 }
  0x27   :  { %1123 = vmatprep.mubr.msk.f32.mxu1 %vm261_vm2, %v34_v42  ;;  %1175 = vmatprep.mubr.msk.f32.mxu0 %vm698_vm3, %v683_v43 }
  0x2a   :  { %1124 = vmatmul.mubr.msk.f32.gmra.mrb[2].mxu1 %vm261_vm2, %v35_v44  ;;  %1176 = vmatmul.mubr.msk.f32.gmra.mrb[2].mxu0 %vm698_vm3, %v684_v45 }
  0x2b   :  { %1126 = vmatprep.mubr.msk.f32.mxu1 %vm261_vm2, %v36_v46  ;;  %1178 = vmatprep.mubr.msk.f32.mxu0 %vm698_vm3, %v685_v47 }
  0x2e   :  { %1127 = vmatmul.mubr.msk.f32.gmra.mrb[4].mxu1 %vm261_vm2, %v37_v48  ;;  %1179 = vmatmul.mubr.msk.f32.gmra.mrb[4].mxu0 %vm698_vm3, %v686_v49 }
  0x2f   :  { %1129 = vmatprep.mubr.msk.f32.mxu1 %vm261_vm2, %v38_v50  ;;  %1181 = vmatprep.mubr.msk.f32.mxu0 %vm698_vm3, %v687_v51 }
  0x32   :  { %1130 = vmatmul.mubr.msk.f32.gmra.mrb[6].mxu1 %vm261_vm2, %v39_v52  ;;  %1182 = vmatmul.mubr.msk.f32.gmra.mrb[6].mxu0 %vm698_vm3, %v688_v53 }
  0x33   :  { %1132 = vmatprep.mubr.msk.f32.mxu1 %vm261_vm2, %v40_v54  ;;  %1184 = vmatprep.mubr.msk.f32.mxu0 %vm698_vm3, %v689_v55 }
  0x36   :  { %1133 = vmatmul.mubr.msk.f32.gmra.mrb[8].mxu1 %vm261_vm2, %v41_v56  ;;  %1185 = vmatmul.mubr.msk.f32.gmra.mrb[8].mxu0 %vm698_vm3, %v690_v57 }
  0x37   :  { %1135 = vmatprep.mubr.msk.f32.mxu1 %vm261_vm2, %v42_v58  ;;  %1187 = vmatprep.mubr.msk.f32.mxu0 %vm698_vm3, %v691_v59 }
  0x3a   :  { %1136 = vmatmul.mubr.msk.f32.gmra.mrb[10].mxu1 %vm261_vm2, %v43_v60  ;;  %1188 = vmatmul.mubr.msk.f32.gmra.mrb[10].mxu0 %vm698_vm3, %v692_v61 }
  0x3b   :  { %1138 = vmatprep.mubr.msk.f32.mxu1 %vm261_vm2, %v44_v62  ;;  %1190 = vmatprep.mubr.msk.f32.mxu0 %vm698_vm3, %v693_v63 }
  0x3e   :  { %1139 = vmatmul.mubr.msk.f32.gmra.mrb[12].mxu1 %vm261_vm2, %v45_v0  ;;  %1191 = vmatmul.mubr.msk.f32.gmra.mrb[12].mxu0 %vm698_vm3, %v694_v1 }
  0x3f   :  { %1141 = vmatprep.mubr.msk.f32.mxu1 %vm261_vm2, %v46_v2  ;;  %1193 = vmatprep.mubr.msk.f32.mxu0 %vm698_vm3, %v695_v3 }
  0x42   :  { %1142 = vmatmul.mubr.msk.f32.gmra.mrb[14].mxu1 %vm261_vm2, %v47_v4  ;;  %1194 = vmatmul.mubr.msk.f32.gmra.mrb[14].mxu0 %vm698_vm3, %v696_v5 }
  0xf9   :  { %v1122_v6 = vpop.f32.mrb[0].mxu1  ;;  %v1174_v7 = vpop.f32.mrb[0].mxu0 }
  0xfa   :  { %v1200_v9 = vadd.f32 %v1174_v7, %v1122_v6  ;;  %v376_v10 = vpop.f32.mrb[1].mxu1  ;;  %v817_v11 = vpop.f32.mrb[1].mxu0 }
  0xfb   :  { %v1201_v12 = vadd.f32 %v817_v11, %v376_v10 }
  0xfc   :  { %v920_v13 = vadd.f32 %v1200_v9, %v1572_v8 }
  0xfd   :  { %v919_v14 = vadd.f32 %v1201_v12, %v1572_v8  ;;  %v1125_v15 = vpop.f32.mrb[2].mxu1  ;;  %v1177_v16 = vpop.f32.mrb[2].mxu0 }
  0xfe   :  { %936 = vst.msk [vmem:[%s1663_s9 + $0x8] sm:$0xff] %vm698_vm3, %v920_v13  ;;  %v1202_v17 = vadd.f32 %v1177_v16, %v1125_v15  ;;  %v386_v18 = vpop.f32.mrb[3].mxu1  ;;  %v827_v19 = vpop.f32.mrb[3].mxu0 }
  0xff   :  { %935 = vst.msk [vmem:[%s1663_s9] sm:$0xff] %vm698_vm3, %v919_v14  ;;  %v1203_v20 = vadd.f32 %v827_v19, %v386_v18 }
 0x100   :  { %v922_v21 = vadd.f32 %v1202_v17, %v1572_v8 }
 0x101   :  { %v921_v22 = vadd.f32 %v1203_v20, %v1572_v8  ;;  %v1128_v23 = vpop.f32.mrb[4].mxu1  ;;  %v1180_v24 = vpop.f32.mrb[4].mxu0 }
 0x102   :  { %938 = vst.msk [vmem:[%s1663_s9 + $0x18] sm:$0xff] %vm698_vm3, %v922_v21  ;;  %v1204_v25 = vadd.f32 %v1180_v24, %v1128_v23  ;;  %v396_v26 = vpop.f32.mrb[5].mxu1  ;;  %v837_v27 = vpop.f32.mrb[5].mxu0 }
 0x103   :  { %937 = vst.msk [vmem:[%s1663_s9 + $0x10] sm:$0xff] %vm698_vm3, %v921_v22  ;;  %v1205_v28 = vadd.f32 %v837_v27, %v396_v26 }
 0x104   :  { %v924_v29 = vadd.f32 %v1204_v25, %v1572_v8 }
 0x105   :  { %v923_v30 = vadd.f32 %v1205_v28, %v1572_v8  ;;  %v1131_v31 = vpop.f32.mrb[6].mxu1  ;;  %v1183_v32 = vpop.f32.mrb[6].mxu0 }
 0x106   :  { %940 = vst.msk [vmem:[%s1663_s9 + $0x28] sm:$0xff] %vm698_vm3, %v924_v29  ;;  %v1206_v33 = vadd.f32 %v1183_v32, %v1131_v31  ;;  %v406_v34 = vpop.f32.mrb[7].mxu1  ;;  %v847_v35 = vpop.f32.mrb[7].mxu0 }
 0x107   :  { %939 = vst.msk [vmem:[%s1663_s9 + $0x20] sm:$0xff] %vm698_vm3, %v923_v30  ;;  %v1207_v36 = vadd.f32 %v847_v35, %v406_v34 }
 0x108   :  { %v926_v37 = vadd.f32 %v1206_v33, %v1572_v8 }
 0x109   :  { %v925_v38 = vadd.f32 %v1207_v36, %v1572_v8  ;;  %v1134_v39 = vpop.f32.mrb[8].mxu1  ;;  %v1186_v40 = vpop.f32.mrb[8].mxu0 }
 0x10a   :  { %942 = vst.msk [vmem:[%s1663_s9 + $0x38] sm:$0xff] %vm698_vm3, %v926_v37  ;;  %v1208_v41 = vadd.f32 %v1186_v40, %v1134_v39  ;;  %v416_v42 = vpop.f32.mrb[9].mxu1  ;;  %v857_v43 = vpop.f32.mrb[9].mxu0 }
 0x10b   :  { %941 = vst.msk [vmem:[%s1663_s9 + $0x30] sm:$0xff] %vm698_vm3, %v925_v38  ;;  %v1209_v44 = vadd.f32 %v857_v43, %v416_v42 }
 0x10c   :  { %v928_v45 = vadd.f32 %v1208_v41, %v1572_v8 }
 0x10d   :  { %v927_v46 = vadd.f32 %v1209_v44, %v1572_v8  ;;  %v1137_v47 = vpop.f32.mrb[10].mxu1  ;;  %v1189_v48 = vpop.f32.mrb[10].mxu0 }
 0x10e   :  { %944 = vst.msk [vmem:[%s1663_s9 + $0x48] sm:$0xff] %vm698_vm3, %v928_v45  ;;  %v1210_v49 = vadd.f32 %v1189_v48, %v1137_v47  ;;  %v426_v50 = vpop.f32.mrb[11].mxu1  ;;  %v867_v51 = vpop.f32.mrb[11].mxu0 }
 0x10f   :  { %943 = vst.msk [vmem:[%s1663_s9 + $0x40] sm:$0xff] %vm698_vm3, %v927_v46  ;;  %v1211_v52 = vadd.f32 %v867_v51, %v426_v50 }
 0x110   :  { %v930_v53 = vadd.f32 %v1210_v49, %v1572_v8 }
 0x111   :  { %v929_v54 = vadd.f32 %v1211_v52, %v1572_v8  ;;  %v1140_v55 = vpop.f32.mrb[12].mxu1  ;;  %v1192_v56 = vpop.f32.mrb[12].mxu0 }
 0x112   :  { %946 = vst.msk [vmem:[%s1663_s9 + $0x58] sm:$0xff] %vm698_vm3, %v930_v53  ;;  %v1212_v57 = vadd.f32 %v1192_v56, %v1140_v55  ;;  %v436_v58 = vpop.f32.mrb[13].mxu1  ;;  %v877_v59 = vpop.f32.mrb[13].mxu0 }
 0x113   :  { %945 = vst.msk [vmem:[%s1663_s9 + $0x50] sm:$0xff] %vm698_vm3, %v929_v54  ;;  %v1213_v60 = vadd.f32 %v877_v59, %v436_v58 }
 0x114   :  { %v932_v61 = vadd.f32 %v1212_v57, %v1572_v8 }
 0x115   :  { %v931_v62 = vadd.f32 %v1213_v60, %v1572_v8  ;;  %v1143_v63 = vpop.f32.mrb[14].mxu1  ;;  %v1195_v0 = vpop.f32.mrb[14].mxu0 }
 0x116   :  { %948 = vst.msk [vmem:[%s1663_s9 + $0x68] sm:$0xff] %vm698_vm3, %v932_v61  ;;  %v1214_v1 = vadd.f32 %v1195_v0, %v1143_v63  ;;  %v446_v2 = vpop.f32.mrb[15].mxu1  ;;  %v887_v3 = vpop.f32.mrb[15].mxu0 }
 0x117   :  { %947 = vst.msk [vmem:[%s1663_s9 + $0x60] sm:$0xff] %vm698_vm3, %v931_v62  ;;  %v1215_v4 = vadd.f32 %v887_v3, %v446_v2 }
 0x118   :  { %v934_v5 = vadd.f32 %v1214_v1, %v1572_v8 }
 0x119   :  { %v933_v6 = vadd.f32 %v1215_v4, %v1572_v8 }
 0x11a   :  { %950 = vst.msk [vmem:[%s1663_s9 + $0x78] sm:$0xff] %vm698_vm3, %v934_v5 }
 0x11b   :  { %949 = vst.msk [vmem:[%s1663_s9 + $0x70] sm:$0xff] %vm698_vm3, %v933_v6 }

</bundles_post_ra>
